<compile_context>
chip_gen: v7x
topology: tpu7x:2x2x1
jax: 0.10.0
libtpu: 0.0.40
codegen_flags: <defaults>
</compile_context>

<pallas_src>
import functools

import numpy as np
import jax
import jax.numpy as jnp
from jax.experimental import pallas as pl
from jax.experimental.pallas import tpu as pltpu

LANE = 128     # lane width  (last-dim tiling unit)
SUBLANE = 8    # sublane     (second-to-last-dim tiling unit for f32)


def _round_up(n, m):
    return ((n + m - 1) // m) * m


def _pad2(a, rows, cols):
    return jnp.pad(a, ((0, rows - a.shape[0]), (0, cols - a.shape[1])))


def _constant_value(a):
    """(is_elementwise_constant, value) for a concrete array, else (False, None)."""
    try:
        h = np.asarray(a)
    except Exception:              # traced / abstract value -> take the general path
        return False, None
    v = h.reshape(-1)[0]
    return bool(np.all(h == v)), float(v)


def _fused_noisy_mlp_kernel(*refs, num_layers, scalar_sigma):
    """Whole NoisyNet forward for one batch tile.

    scalar_sigma=True:
        refs = [sigma_smem (num_layers,), x (tb,D0p),
                W_0..W_{L-1}, eps_0..eps_{L-1}, out (tb,DLp)]
    scalar_sigma=False:
        refs = [x, W_0.., sigma_0.., eps_0.., out]
    Weights / sigma / eps are pre-transposed to [Din_pad, Dout_pad].
    """
    if scalar_sigma:
        sig_smem = refs[0]                                   # SMEM scalars
        x_ref = refs[1]
        w_refs = refs[2:2 + num_layers]
        eps_refs = refs[2 + num_layers:2 + 2 * num_layers]
        o_ref = refs[2 + 2 * num_layers]
        sig_refs = None
    else:
        x_ref = refs[0]
        w_refs = refs[1:1 + num_layers]
        sig_refs = refs[1 + num_layers:1 + 2 * num_layers]
        eps_refs = refs[1 + 2 * num_layers:1 + 3 * num_layers]
        o_ref = refs[1 + 3 * num_layers]

    h = x_ref[...]                                           # stays in VMEM/vregs
    for li in range(num_layers):
        w = w_refs[li][...]
        if scalar_sigma:
            sig = sig_smem[li].astype(w.dtype)               # scalar read, SMEM
            w_eff = w + sig * eps_refs[li][...]              # VPU elementwise
        else:
            w_eff = w + sig_refs[li][...] * eps_refs[li][...]
        h = jnp.dot(h.astype(w.dtype), w_eff,                # MXU, f32 accumulate
                    preferred_element_type=jnp.float32)
        if li < num_layers - 1:
            h = jnp.maximum(h, 0.0)                          # ReLU between layers
    o_ref[...] = h.astype(o_ref.dtype)


def noisynet_forward(x, params, *, tile_b=128, param_dtype=jnp.float32):
    """Fused NoisyNet forward.

    x      : [B, D0] activations
    params : list of (weight, sigma, eps) per layer in torch layout,
             each of shape [Out, In].
    """
    num_layers = len(params)
    B, d0 = x.shape
    dims = [d0] + [w.shape[0] for (w, _, _) in params]
    dims_p = [_round_up(d, LANE) for d in dims]              # lane-dense feature dims

    tb = max(SUBLANE, min(tile_b, _round_up(B, SUBLANE)))    # batch tile
    b_pad = _round_up(B, tb)
    grid_b = b_pad // tb

    itemsize = jnp.dtype(param_dtype).itemsize
    out_itemsize = jnp.dtype(x.dtype).itemsize
    x_p = _pad2(x.astype(param_dtype), b_pad, dims_p[0])

    # sigma is a full trainable [Out, In] Parameter; collapse to one scalar per
    # layer only when every layer's sigma is element-wise constant (init state).
    consts = [_constant_value(s) for (_, s, _) in params]
    scalar_sigma = all(ok for ok, _ in consts)

    w_ts, sig_ts, eps_ts = [], [], []
    for li, (w, sigma, eps) in enumerate(params):
        in_p, out_p = dims_p[li], dims_p[li + 1]
        assert w.shape == (dims[li + 1], dims[li])
        assert tuple(jnp.shape(eps)) == (dims[li + 1], dims[li])
        # One-time transpose to [In, Out] + zero-pad to lane multiples.
        # Zero-padded rows/cols contribute exactly 0 to the matmul.
        w_ts.append(_pad2(jnp.asarray(w).T.astype(param_dtype), in_p, out_p))
        eps_ts.append(_pad2(jnp.asarray(eps).T.astype(param_dtype), in_p, out_p))
        if not scalar_sigma:
            sig_ts.append(_pad2(jnp.asarray(sigma).T.astype(param_dtype), in_p, out_p))

    x_spec = pl.BlockSpec((tb, dims_p[0]), lambda i: (i, 0))
    out_spec = pl.BlockSpec((tb, dims_p[-1]), lambda i: (i, 0))

    def mat_spec(li):
        # Constant block index -> resident across the batch grid axis.
        return pl.BlockSpec((dims_p[li], dims_p[li + 1]), lambda i: (0, 0))

    if scalar_sigma:
        sigmas = jnp.asarray([v for _, v in consts], jnp.float32)  # (L,) -> SMEM
        in_specs = [pl.BlockSpec(memory_space=pltpu.MemorySpace.SMEM), x_spec]
        in_specs += [mat_spec(li) for li in range(num_layers)]      # weights
        in_specs += [mat_spec(li) for li in range(num_layers)]      # eps
        operands = (sigmas, x_p, *w_ts, *eps_ts)
        mats_per_layer = 2
    else:
        in_specs = [x_spec]
        in_specs += [mat_spec(li) for li in range(num_layers)]      # weights
        in_specs += [mat_spec(li) for li in range(num_layers)]      # sigma
        in_specs += [mat_spec(li) for li in range(num_layers)]      # eps
        operands = (x_p, *w_ts, *sig_ts, *eps_ts)
        mats_per_layer = 3

    mat_elems = sum(dims_p[i] * dims_p[i + 1] for i in range(num_layers))
    flops = int(2 * b_pad * mat_elems)
    bytes_accessed = int(
        mats_per_layer * mat_elems * itemsize          # resident W/eps(/sigma)
        + b_pad * dims_p[0] * itemsize                 # input activations
        + b_pad * dims_p[-1] * out_itemsize)           # output
    cost = pl.CostEstimate(flops=flops, transcendentals=0,
                           bytes_accessed=bytes_accessed)

    # Size scoped VMEM to the resident weight footprint (conservatively assume
    # double-buffering everywhere); never below the 32 MiB default, never above
    # 64 MiB (physical ceiling on v7x per TensorCore).
    resident = mats_per_layer * mat_elems * itemsize
    pipelined = 2 * tb * (dims_p[0] * itemsize + dims_p[-1] * out_itemsize)
    vmem_need = 2 * resident + pipelined + (2 << 20)
    vmem_limit = int(min(max(vmem_need, 32 << 20), 64 << 20))

    kernel = functools.partial(_fused_noisy_mlp_kernel,
                               num_layers=num_layers, scalar_sigma=scalar_sigma)
    out_padded = pl.pallas_call(
        kernel,
        out_shape=jax.ShapeDtypeStruct((b_pad, dims_p[-1]), x.dtype),
        grid=(grid_b,),
        in_specs=in_specs,
        out_specs=out_spec,
        compiler_params=pltpu.CompilerParams(
            dimension_semantics=("parallel",),
            vmem_limit_bytes=vmem_limit),
        cost_estimate=cost,
    )(*operands)

    return out_padded[:B, :dims[-1]]


def _reference_forward(x, params):
    n = len(params)
    for i, (w, sigma, eps) in enumerate(params):
        x = x @ (w + sigma * eps).T
        if i < n - 1:
            x = jnp.maximum(x, 0.0)
    return x


if __name__ == "__main__":
    key = jax.random.PRNGKey(0)

    # Small MLP consistent with a NoisyNet over two nn.Linear-like layers.
    batch = 8
    dims = [32, 64, 16]          # in -> hidden -> out

    params = []
    for li in range(len(dims) - 1):
        in_f, out_f = dims[li], dims[li + 1]
        key, kw, ke = jax.random.split(key, 3)
        # torch.nn.Linear default init: U(-1/sqrt(in), 1/sqrt(in))
        bound = 1.0 / jnp.sqrt(jnp.float32(in_f))
        w = jax.random.uniform(kw, (out_f, in_f), jnp.float32, -bound, bound)
        sigma = jnp.full((out_f, in_f), 0.017, jnp.float32)      # fill_(0.017)
        eps = jax.random.normal(ke, (out_f, in_f), jnp.float32)  # noise buffer
        params.append((w, sigma, eps))
        # TODO(synk): sample_noise()/remove_noise() are host-side buffer
        # management in the torch module; eps is supplied as an input here.

    key, kx = jax.random.split(key)
    x = jax.random.normal(kx, (batch, dims[0]), jnp.float32)

    # Path 1: init-state sigma (element-wise constant) -> scalar-sigma fast path.
    out = jax.block_until_ready(noisynet_forward(x, params))
    ref = _reference_forward(x, params)
    assert out.shape == (batch, dims[-1])
    assert jnp.allclose(out, ref, atol=1e-4, rtol=1e-4), "mismatch (scalar sigma)"

    # Path 2: a perturbed (non-constant) sigma -> full-tensor sigma path.
    key, ks = jax.random.split(key)
    params2 = [(w, s + 0.01 * jax.random.normal(jax.random.fold_in(ks, i), s.shape), e)
               for i, (w, s, e) in enumerate(params)]
    out2 = jax.block_until_ready(noisynet_forward(x, params2))
    ref2 = _reference_forward(x, params2)
    assert jnp.allclose(out2, ref2, atol=1e-4, rtol=1e-4), "mismatch (full sigma)"

    print("KERNEL_OK")
</pallas_src>

<mosaic_0001>
module attributes {stable_mosaic.version = 11 : i64} {
  func.func @_fused_noisy_mlp_kernel(%arg0: i32, %arg1: memref<2xf32, #tpu.memory_space<smem>>, %arg2: memref<8x128xf32, #tpu.memory_space<vmem>>, %arg3: memref<128x128xf32, #tpu.memory_space<vmem>>, %arg4: memref<128x128xf32, #tpu.memory_space<vmem>>, %arg5: memref<128x128xf32, #tpu.memory_space<vmem>>, %arg6: memref<128x128xf32, #tpu.memory_space<vmem>>, %arg7: memref<8x128xf32, #tpu.memory_space<vmem>>) attributes {dimension_semantics = [#tpu.dimension_semantics<parallel>], iteration_bounds = array<i64: 1>, scalar_prefetch = 0 : i64, scratch_operands = 0 : i64, tpu.core_type = #tpu.core_type<tc>, window_params = [{transform_indices = @transform_0, window_bounds = array<i64: 2>}, {transform_indices = @transform_1, window_bounds = array<i64: 8, 128>}, {pipeline_mode = #tpu.pipeline_mode<synchronous>, transform_indices = @transform_2, window_bounds = array<i64: 128, 128>}, {pipeline_mode = #tpu.pipeline_mode<synchronous>, transform_indices = @transform_3, window_bounds = array<i64: 128, 128>}, {pipeline_mode = #tpu.pipeline_mode<synchronous>, transform_indices = @transform_4, window_bounds = array<i64: 128, 128>}, {pipeline_mode = #tpu.pipeline_mode<synchronous>, transform_indices = @transform_5, window_bounds = array<i64: 128, 128>}, {transform_indices = @transform_6, window_bounds = array<i64: 8, 128>}]} {
    %c0 = arith.constant 0 : index
    %c0_0 = arith.constant 0 : index
    %0 = vector.load %arg2[%c0, %c0_0] : memref<8x128xf32, #tpu.memory_space<vmem>>, vector<8x128xf32>
    %c0_1 = arith.constant 0 : index
    %c0_2 = arith.constant 0 : index
    %1 = vector.load %arg3[%c0_1, %c0_2] : memref<128x128xf32, #tpu.memory_space<vmem>>, vector<128x128xf32>
    %c0_3 = arith.constant 0 : index
    %2 = memref.load %arg1[%c0_3] : memref<2xf32, #tpu.memory_space<smem>>
    %c0_4 = arith.constant 0 : index
    %c0_5 = arith.constant 0 : index
    %3 = vector.load %arg5[%c0_4, %c0_5] : memref<128x128xf32, #tpu.memory_space<vmem>>, vector<128x128xf32>
    %4 = vector.broadcast %2 : f32 to vector<128x128xf32>
    %5 = arith.mulf %4, %3 : vector<128x128xf32>
    %6 = arith.addf %1, %5 : vector<128x128xf32>
    %cst = arith.constant dense<0.000000e+00> : vector<8x128xf32>
    %7 = tpu.matmul %0, %6, %cst {dimension_numbers = #tpu.dot_dimension_numbers<[1], [0], [0], [1], [0, 0, 1, 1], [], []>} : vector<8x128xf32>, vector<128x128xf32>, vector<8x128xf32> -> vector<8x128xf32>
    %cst_6 = arith.constant 0.000000e+00 : f32
    %8 = vector.broadcast %cst_6 : f32 to vector<8x128xf32>
    %9 = arith.maximumf %7, %8 : vector<8x128xf32>
    %c0_7 = arith.constant 0 : index
    %c0_8 = arith.constant 0 : index
    %10 = vector.load %arg4[%c0_7, %c0_8] : memref<128x128xf32, #tpu.memory_space<vmem>>, vector<128x128xf32>
    %c1 = arith.constant 1 : index
    %11 = memref.load %arg1[%c1] : memref<2xf32, #tpu.memory_space<smem>>
    %c0_9 = arith.constant 0 : index
    %c0_10 = arith.constant 0 : index
    %12 = vector.load %arg6[%c0_9, %c0_10] : memref<128x128xf32, #tpu.memory_space<vmem>>, vector<128x128xf32>
    %13 = vector.broadcast %11 : f32 to vector<128x128xf32>
    %14 = arith.mulf %13, %12 : vector<128x128xf32>
    %15 = arith.addf %10, %14 : vector<128x128xf32>
    %cst_11 = arith.constant dense<0.000000e+00> : vector<8x128xf32>
    %16 = tpu.matmul %9, %15, %cst_11 {dimension_numbers = #tpu.dot_dimension_numbers<[1], [0], [0], [1], [0, 0, 1, 1], [], []>} : vector<8x128xf32>, vector<128x128xf32>, vector<8x128xf32> -> vector<8x128xf32>
    %c0_12 = arith.constant 0 : index
    %c0_13 = arith.constant 0 : index
    %17 = vector.load %arg7[%c0_12, %c0_13] : memref<8x128xf32, #tpu.memory_space<vmem>>, vector<8x128xf32>
    tpu.vector_store %arg7[%c0_12, %c0_13], %16 {strides = array<i32>} : memref<8x128xf32, #tpu.memory_space<vmem>>, vector<8x128xf32>,
    return
  }
  func.func @transform_0(%arg0: i32) -> i32 {
    %c0_i32 = arith.constant 0 : i32
    %c0_i32_0 = arith.constant 0 : i32
    return %c0_i32 : i32
  }
  func.func @transform_1(%arg0: i32) -> (i32, i32) {
    %c0_i32 = arith.constant 0 : i32
    %c0_i32_0 = arith.constant 0 : i32
    return %arg0, %c0_i32 : i32, i32
  }
  func.func @transform_2(%arg0: i32) -> (i32, i32) {
    %c0_i32 = arith.constant 0 : i32
    %c0_i32_0 = arith.constant 0 : i32
    %c0_i32_1 = arith.constant 0 : i32
    return %c0_i32, %c0_i32_0 : i32, i32
  }
  func.func @transform_3(%arg0: i32) -> (i32, i32) {
    %c0_i32 = arith.constant 0 : i32
    %c0_i32_0 = arith.constant 0 : i32
    %c0_i32_1 = arith.constant 0 : i32
    return %c0_i32, %c0_i32_0 : i32, i32
  }
  func.func @transform_4(%arg0: i32) -> (i32, i32) {
    %c0_i32 = arith.constant 0 : i32
    %c0_i32_0 = arith.constant 0 : i32
    %c0_i32_1 = arith.constant 0 : i32
    return %c0_i32, %c0_i32_0 : i32, i32
  }
  func.func @transform_5(%arg0: i32) -> (i32, i32) {
    %c0_i32 = arith.constant 0 : i32
    %c0_i32_0 = arith.constant 0 : i32
    %c0_i32_1 = arith.constant 0 : i32
    return %c0_i32, %c0_i32_0 : i32, i32
  }
  func.func @transform_6(%arg0: i32) -> (i32, i32) {
    %c0_i32 = arith.constant 0 : i32
    %c0_i32_0 = arith.constant 0 : i32
    return %arg0, %c0_i32 : i32, i32
  }
}

</mosaic_0001>

<bundles_post_ra>
// kernel: tpu_custom_call.1
= control target key start
LH: loop header
LB: loop body
LE: loop exit
PB: predicated region body
PF: predicated region fallthrough
CT: control target
= control target key end

     0   :  { %11 = vsyncpa [#allocation5], 0  ;;  %s906_s0 = inlined_call_operand.hbm [shape: f32[2], index: 0, kind: input, shape index: {}]   ;;  %s907_s1 = inlined_call_operand.hbm [shape: f32[8,128], index: 1, kind: input, shape index: {}]   ;;  %s908_s2 = inlined_call_operand.hbm [shape: f32[128,128], index: 2, kind: input, shape index: {}]   ;;  %s909_s3 = inlined_call_operand.hbm [shape: f32[128,128], index: 3, kind: input, shape index: {}]   ;;  %s910_s4 = inlined_call_operand.hbm [shape: f32[128,128], index: 4, kind: input, shape index: {}]   ;;  %s911_s5 = inlined_call_operand.hbm [shape: f32[128,128], index: 5, kind: input, shape index: {}]   ;;  %s912_s6 = inlined_call_operand.hbm [shape: f32[8,128], index: 6, kind: output, shape index: {}]  }
   0x1   :  { %12 = vsyncpa [#allocation3], 0 }
   0x2   :  { %13 = vsyncpa [#allocation8], 0 }
   0x3   :  { %14 = vsyncpa [#allocation11], 0 }
   0x4   :  { %15 = vsyncpa [#allocation4], 0  ;;  %s711_s21 = smov [#allocation7]   ;;  %s559_s25 = scalar_lea.hbm %s908_s2, 2048 }
   0x5   :  { %s39_s22 = sshll.u32 %s711_s21, 4  ;;  %p560_p0 = scmp.ne.s32.totalorder %s908_s2, %s559_s25  ;;  %s40_s22 = int_to_ptr.vmem [resolvable:$true] %s39_s22 }
   0x6   :  { %p563_p1 = scmp.lt.u32.totalorder %s559_s25, %s908_s2 }
   0x8   :  { %p565_p2 = pnand %p563_p1, %p560_p0 }
   0xa   :  { %568 = shalt.err (!%p565_p2)
}
   0xb   :  { %s569_s30 = scalar_lea.vmem %s40_s22, 2048  ;;  %p574_p4 = scmp.lt.s32.totalorder %s40_s22, %s40_s22 }
   0xc   :  { %p570_p3 = scmp.ne.s32.totalorder %s40_s22, %s569_s30  ;;  %p575_p5 = scmp.lt.s32.totalorder %s569_s30, %s569_s30 }
   0xe   :  { %p576_p6 = por %p575_p5, %p574_p4 }
  0x10   :  { %p577_p7 = pnand %p576_p6, %p570_p3 }
  0x12   :  { %580 = shalt.err (!%p577_p7)
}
  0x13   :  { %s712_s7 = smov 128   ;;  %s713_s8 = smov 8  }
  0x14   :  { %45 = dma.hbm_to_vmem [thread:$0]  %s908_s2, 2048, %s40_s22, [#allocation8], %s712_s7, %s712_s7, %s713_s8  }
  0x15   :  { %s714_s11 = smov [#allocation10]   ;;  %s581_s15 = scalar_lea.hbm %s910_s4, 2048 }
  0x16   :  { %s63_s12 = sshll.u32 %s714_s11, 4  ;;  %p582_p8 = scmp.ne.s32.totalorder %s910_s4, %s581_s15  ;;  %s64_s12 = int_to_ptr.vmem [resolvable:$true] %s63_s12 }
  0x17   :  { %p585_p9 = scmp.lt.u32.totalorder %s581_s15, %s910_s4 }
  0x19   :  { %p587_p10 = pnand %p585_p9, %p582_p8 }
  0x1b   :  { %590 = shalt.err (!%p587_p10)
}
  0x1c   :  { %s591_s20 = scalar_lea.vmem %s64_s12, 2048  ;;  %p596_p12 = scmp.lt.s32.totalorder %s64_s12, %s64_s12 }
  0x1d   :  { %p592_p11 = scmp.ne.s32.totalorder %s64_s12, %s591_s20  ;;  %p597_p13 = scmp.lt.s32.totalorder %s591_s20, %s591_s20 }
  0x1f   :  { %p598_p0 = por %p597_p13, %p596_p12 }
  0x21   :  { %p599_p1 = pnand %p598_p0, %p592_p11 }
  0x23   :  { %602 = shalt.err (!%p599_p1)
}
  0x24   :  { %69 = dma.hbm_to_vmem [thread:$0]  %s910_s4, 2048, %s64_s12, [#allocation11], %s712_s7, %s712_s7, %s713_s8  }
  0x25   :  { %s603_s24 = scalar_lea.hbm %s906_s0, 16 }
  0x26   :  { %p604_p2 = scmp.ne.s32.totalorder %s906_s0, %s603_s24  ;;  %p607_p3 = scmp.lt.u32.totalorder %s603_s24, %s906_s0 }
  0x28   :  { %p609_p4 = pnand %p607_p3, %p604_p2 }
  0x2a   :  { %612 = shalt.err (!%p609_p4)
}
  0x2b   :  { %s715_s29 = smov [#allocation2]   ;;  %s716_s4 = smov [#allocation6]  }
  0x2c   :  { %23 = dma.hbm_to_smem %s906_s0, 16, %s715_s29, [#allocation5]  }
  0x2d   :  { %s30_s10 = sshll.u32 %s716_s4, 4  ;;  %s717_s11 = smov [#allocation9]   ;;  %s31_s10 = int_to_ptr.vmem [resolvable:$true] %s30_s10 }
  0x2e   :  { %s51_s12 = sshll.u32 %s717_s11, 4  ;;  %s613_s15 = scalar_lea.hbm %s907_s1, 128  ;;  %s52_s12 = int_to_ptr.vmem [resolvable:$true] %s51_s12 }
  0x2f   :  { %p614_p5 = scmp.ne.s32.totalorder %s907_s1, %s613_s15  ;;  %p617_p6 = scmp.lt.u32.totalorder %s613_s15, %s907_s1 }
  0x31   :  { %p619_p7 = pnand %p617_p6, %p614_p5 }
  0x33   :  { %622 = shalt.err (!%p619_p7)
}
  0x34   :  { %s623_s0 = scalar_lea.vmem %s31_s10, 128  ;;  %p628_p9 = scmp.lt.s32.totalorder %s31_s10, %s31_s10 }
  0x35   :  { %p624_p8 = scmp.ne.s32.totalorder %s31_s10, %s623_s0  ;;  %p629_p10 = scmp.lt.s32.totalorder %s623_s0, %s623_s0 }
  0x37   :  { %p630_p11 = por %p629_p10, %p628_p9 }
  0x39   :  { %p631_p12 = pnand %p630_p11, %p624_p8 }
  0x3b   :  { %634 = shalt.err (!%p631_p12)
}
  0x3c   :  { %33 = dma.hbm_to_vmem [thread:$0]  %s907_s1, 128, %s31_s10, [#allocation3]  }
  0x3d   :  { %s635_s23 = scalar_lea.hbm %s909_s3, 2048 }
  0x3e   :  { %p636_p13 = scmp.ne.s32.totalorder %s909_s3, %s635_s23  ;;  %p639_p0 = scmp.lt.u32.totalorder %s635_s23, %s909_s3 }
  0x40   :  { %p641_p1 = pnand %p639_p0, %p636_p13 }
  0x42   :  { %644 = shalt.err (!%p641_p1)
}
  0x43   :  { %s645_s28 = scalar_lea.vmem %s52_s12, 2048  ;;  %p650_p3 = scmp.lt.s32.totalorder %s52_s12, %s52_s12 }
  0x44   :  { %p646_p2 = scmp.ne.s32.totalorder %s52_s12, %s645_s28  ;;  %p651_p4 = scmp.lt.s32.totalorder %s645_s28, %s645_s28 }
  0x46   :  { %p652_p5 = por %p651_p4, %p650_p3 }
  0x48   :  { %p653_p6 = pnand %p652_p5, %p646_p2 }
  0x4a   :  { %656 = shalt.err (!%p653_p6)
}
  0x4b   :  { %57 = dma.hbm_to_vmem [thread:$0]  %s909_s3, 2048, %s52_s12, [#allocation8], %s712_s7, %s712_s7, %s713_s8  }
  0x4c   :  { %s718_s30 = smov [#allocation12]   ;;  %s657_s11 = scalar_lea.hbm %s911_s5, 2048 }
  0x4d   :  { %s75_s9 = sshll.u32 %s718_s30, 4  ;;  %p658_p7 = scmp.ne.s32.totalorder %s911_s5, %s657_s11  ;;  %s76_s9 = int_to_ptr.vmem [resolvable:$true] %s75_s9 }
  0x4e   :  { %p661_p8 = scmp.lt.u32.totalorder %s657_s11, %s911_s5 }
  0x50   :  { %p663_p9 = pnand %p661_p8, %p658_p7 }
  0x52   :  { %666 = shalt.err (!%p663_p9)
}
  0x53   :  { %s667_s17 = scalar_lea.vmem %s76_s9, 2048  ;;  %p672_p11 = scmp.lt.s32.totalorder %s76_s9, %s76_s9 }
  0x54   :  { %p668_p10 = scmp.ne.s32.totalorder %s76_s9, %s667_s17  ;;  %p673_p12 = scmp.lt.s32.totalorder %s667_s17, %s667_s17 }
  0x56   :  { %p674_p13 = por %p673_p12, %p672_p11 }
  0x58   :  { %p675_p0 = pnand %p674_p13, %p668_p10 }
  0x5a   :  { %678 = shalt.err (!%p675_p0)
}
  0x5b   :  { %81 = dma.hbm_to_vmem [thread:$0]  %s911_s5, 2048, %s76_s9, [#allocation11], %s712_s7, %s712_s7, %s713_s8  }
  0x5c   :  { %701 = dma.done.wait [#allocation5], 16  }
  0x5d   :  { %702 = vsyncadd [#allocation5], 4294967280 }
  0x5e   :  { %703 = dma.done.wait [#allocation3], 128  }
  0x5f   :  { %704 = vsyncadd [#allocation3], 4294967168 }
  0x60   :  { %705 = dma.done.wait [#allocation8], 4096  }
  0x61   :  { %706 = vsyncadd [#allocation8], 4294963200 }
  0x62   :  { %707 = dma.done.wait [#allocation11], 4096  }
  0x63   :  { %708 = vsyncadd [#allocation11], 4294963200 }
  0x64   :  { %100 = sfence }
  0x65   :  { %s118_s18 = sld [smem:[#allocation2]]  ;;  %v719_v0 = vmov 0.0|0.0   ;;  %vm720_vm0 = vmmov 0   ;;  %v721_v1 = vmov 0.0   ;;  %v119_v2 = vld [vmem:[#allocation10] sm:$0xff]  ;;  %v120_v3 = vld [vmem:[#allocation10 + $0x8] sm:$0xff] }
  0x66   :  { %499 = vmatprep.subr.bf16.mxu0 %v719_v0  ;;  %523 = vmatprep.subr.bf16.mxu1 %v719_v0  ;;  %v121_v4 = vld [vmem:[#allocation10 + $0x10] sm:$0xff]  ;;  %v122_v5 = vld [vmem:[#allocation10 + $0x18] sm:$0xff]  ;;  %v102_v6 = vld [vmem:[#allocation7] sm:$0xff]  ;;  %s394_s5 = sld [smem:[#allocation2 + $0x1]]  ;;  %s722_s7 = smov [#allocation13]  }
  0x67   :  { %461 = vmatprep.mubr.msk.f32.mxu0 %vm720_vm0, %v721_v1  ;;  %496 = vmatprep.mubr.msk.f32.mxu1 %vm720_vm0, %v721_v1  ;;  %v123_v7 = vld [vmem:[#allocation10 + $0x20] sm:$0xff]  ;;  %v124_v8 = vld [vmem:[#allocation10 + $0x28] sm:$0xff]  ;;  %v104_v11 = vld [vmem:[#allocation7 + $0x10] sm:$0xff]  ;;  %s382_s8 = sshll.u32 %s722_s7, 4  ;;  %s383_s8 = int_to_ptr.vmem [resolvable:$true] %s382_s8 }
  0x68   :  { %v103_v9 = vld [vmem:[#allocation7 + $0x8] sm:$0xff]  ;;  %v105_v12 = vld [vmem:[#allocation7 + $0x18] sm:$0xff]  ;;  %v125_v19 = vld [vmem:[#allocation10 + $0x30] sm:$0xff]  ;;  %s679_s19 = scalar_lea.vmem %s383_s8, 128  ;;  %p684_p2 = scmp.lt.s32.totalorder %s383_s8, %s383_s8 }
  0x69   :  { %v126_v24 = vld [vmem:[#allocation10 + $0x38] sm:$0xff]  ;;  %v106_v25 = vld [vmem:[#allocation7 + $0x20] sm:$0xff]  ;;  %v107_v26 = vld [vmem:[#allocation7 + $0x28] sm:$0xff]  ;;  %p680_p1 = scmp.ne.s32.totalorder %s383_s8, %s679_s19  ;;  %p685_p3 = scmp.lt.s32.totalorder %s679_s19, %s679_s19 }
  0x6a   :  { %v108_v29 = vld [vmem:[#allocation7 + $0x30] sm:$0xff]  ;;  %v109_v30 = vld [vmem:[#allocation7 + $0x38] sm:$0xff]  ;;  %v127_v35 = vld [vmem:[#allocation10 + $0x40] sm:$0xff] }
  0x6b   :  { %v844_v10 = vstv %s118_s18  ;;  %v128_v36 = vld [vmem:[#allocation10 + $0x48] sm:$0xff]  ;;  %v256_v37 = vld [vmem:[#allocation12] sm:$0xff]  ;;  %v258_v39 = vld [vmem:[#allocation12 + $0x10] sm:$0xff]  ;;  %p686_p4 = por %p685_p3, %p684_p2 }
  0x6c   :  { %v136_v13 = vmul.f32 %v844_v10, %v119_v2  ;;  %v137_v14 = vmul.f32 %v844_v10, %v120_v3  ;;  %v138_v15 = vmul.f32 %v844_v10, %v121_v4  ;;  %v139_v16 = vmul.f32 %v844_v10, %v122_v5  ;;  %v257_v38 = vld [vmem:[#allocation12 + $0x8] sm:$0xff]  ;;  %v259_v40 = vld [vmem:[#allocation12 + $0x18] sm:$0xff]  ;;  %v239_v42 = vld [vmem:[#allocation9] sm:$0xff] }
  0x6d   :  { %v140_v17 = vmul.f32 %v844_v10, %v123_v7  ;;  %v141_v18 = vmul.f32 %v844_v10, %v124_v8  ;;  %v142_v28 = vmul.f32 %v844_v10, %v125_v19  ;;  %v143_v31 = vmul.f32 %v844_v10, %v126_v24  ;;  %v240_v43 = vld [vmem:[#allocation9 + $0x8] sm:$0xff]  ;;  %v260_v45 = vld [vmem:[#allocation12 + $0x20] sm:$0xff]  ;;  %v241_v50 = vld [vmem:[#allocation9 + $0x10] sm:$0xff]  ;;  %p687_p5 = pnand %p686_p4, %p680_p1 }
  0x6e   :  { %v152_v20 = vadd.f32 %v136_v13, %v102_v6  ;;  %v153_v21 = vadd.f32 %v137_v14, %v103_v9  ;;  %v154_v22 = vadd.f32 %v138_v15, %v104_v11  ;;  %v155_v23 = vadd.f32 %v139_v16, %v105_v12  ;;  %v242_v51 = vld [vmem:[#allocation9 + $0x18] sm:$0xff]  ;;  %v261_v52 = vld [vmem:[#allocation12 + $0x28] sm:$0xff]  ;;  %v129_v54 = vld [vmem:[#allocation10 + $0x50] sm:$0xff] }
  0x6f   :  { %v156_v33 = vadd.f32 %v140_v17, %v106_v25  ;;  %v157_v34 = vadd.f32 %v141_v18, %v107_v26  ;;  %v158_v41 = vadd.f32 %v142_v28, %v108_v29  ;;  %v855_v44 = vstv %s394_s5  ;;  %v110_v58 = vld [vmem:[#allocation7 + $0x40] sm:$0xff]  ;;  %v111_v59 = vld [vmem:[#allocation7 + $0x48] sm:$0xff]  ;;  %v130_v60 = vld [vmem:[#allocation10 + $0x58] sm:$0xff] }
  0x70   :  { %v500_v27 = vpack.c.bf16 %v153_v21, %v152_v20  ;;  %v503_v32 = vpack.c.bf16 %v155_v23, %v154_v22  ;;  %v159_v46 = vadd.f32 %v143_v31, %v109_v30  ;;  %v144_v47 = vmul.f32 %v844_v10, %v127_v35  ;;  %v262_v4 = vld [vmem:[#allocation12 + $0x30] sm:$0xff]  ;;  %v243_v7 = vld [vmem:[#allocation9 + $0x20] sm:$0xff]  ;;  %v244_v8 = vld [vmem:[#allocation9 + $0x28] sm:$0xff] }
  0x71   :  { %v145_v48 = vmul.f32 %v844_v10, %v128_v36  ;;  %v273_v49 = vmul.f32 %v855_v44, %v256_v37  ;;  %v506_v53 = vpack.c.bf16 %v157_v34, %v156_v33  ;;  %v274_v55 = vmul.f32 %v855_v44, %v257_v38  ;;  %v263_v9 = vld [vmem:[#allocation12 + $0x38] sm:$0xff]  ;;  %v131_v14 = vld [vmem:[#allocation10 + $0x60] sm:$0xff]  ;;  %v112_v16 = vld [vmem:[#allocation7 + $0x50] sm:$0xff] }
  0x72   :  { %501 = vmatpush3.bf16.msra.mxu0 %v500_v27  ;;  %v275_v56 = vmul.f32 %v855_v44, %v258_v39  ;;  %v276_v57 = vmul.f32 %v855_v44, %v259_v40  ;;  %v277_v62 = vmul.f32 %v855_v44, %v260_v45  ;;  %v278_v3 = vmul.f32 %v855_v44, %v261_v52  ;;  %v113_v17 = vld [vmem:[#allocation7 + $0x58] sm:$0xff]  ;;  %v132_v18 = vld [vmem:[#allocation10 + $0x68] sm:$0xff]  ;;  %v264_v24 = vld [vmem:[#allocation12 + $0x40] sm:$0xff] }
  0x73   :  { %502 = vmatprep.subr.bf16.mxu0 %v719_v0  ;;  %v289_v61 = vadd.f32 %v273_v49, %v239_v42  ;;  %v290_v63 = vadd.f32 %v274_v55, %v240_v43  ;;  %v509_v5 = vpack.c.bf16 %v159_v46, %v158_v41  ;;  %v146_v6 = vmul.f32 %v844_v10, %v129_v54  ;;  %v245_v26 = vld [vmem:[#allocation9 + $0x30] sm:$0xff]  ;;  %v246_v27 = vld [vmem:[#allocation9 + $0x38] sm:$0xff]  ;;  %v265_v28 = vld [vmem:[#allocation12 + $0x48] sm:$0xff] }
  0x74   :  { %v291_v1 = vadd.f32 %v275_v56, %v241_v50  ;;  %v292_v2 = vadd.f32 %v276_v57, %v242_v51  ;;  %v160_v11 = vadd.f32 %v144_v47, %v110_v58  ;;  %v161_v12 = vadd.f32 %v145_v48, %v111_v59  ;;  %v133_v33 = vld [vmem:[#allocation10 + $0x70] sm:$0xff]  ;;  %v114_v34 = vld [vmem:[#allocation7 + $0x60] sm:$0xff]  ;;  %v115_v35 = vld [vmem:[#allocation7 + $0x68] sm:$0xff] }
  0x75   :  { %v147_v13 = vmul.f32 %v844_v10, %v130_v60  ;;  %v524_v15 = vpack.c.bf16 %v290_v63, %v289_v61  ;;  %v279_v19 = vmul.f32 %v855_v44, %v262_v4  ;;  %v293_v21 = vadd.f32 %v277_v62, %v243_v7  ;;  %v134_v36 = vld [vmem:[#allocation10 + $0x78] sm:$0xff]  ;;  %v247_v41 = vld [vmem:[#allocation9 + $0x40] sm:$0xff]  ;;  %v248_v45 = vld [vmem:[#allocation9 + $0x48] sm:$0xff] }
  0x76   :  { %504 = vmatpush3.bf16.msra.mxu0 %v503_v32  ;;  %v527_v20 = vpack.c.bf16 %v292_v2, %v291_v1  ;;  %v294_v22 = vadd.f32 %v278_v3, %v244_v8  ;;  %v280_v23 = vmul.f32 %v855_v44, %v263_v9  ;;  %v148_v25 = vmul.f32 %v844_v10, %v131_v14  ;;  %v266_v46 = vld [vmem:[#allocation12 + $0x50] sm:$0xff]  ;;  %v267_v47 = vld [vmem:[#allocation12 + $0x58] sm:$0xff]  ;;  %v268_v59 = vld [vmem:[#allocation12 + $0x60] sm:$0xff] }
  0x77   :  { %505 = vmatprep.subr.bf16.mxu0 %v719_v0  ;;  %525 = vmatpush3.bf16.msra.mxu1 %v524_v15  ;;  %v512_v29 = vpack.c.bf16 %v161_v12, %v160_v11  ;;  %v162_v30 = vadd.f32 %v146_v6, %v112_v16  ;;  %v163_v31 = vadd.f32 %v147_v13, %v113_v17  ;;  %v116_v52 = vld [vmem:[#allocation7 + $0x70] sm:$0xff]  ;;  %v250_v61 = vld [vmem:[#allocation9 + $0x58] sm:$0xff]  ;;  %v269_v62 = vld [vmem:[#allocation12 + $0x68] sm:$0xff] }
  0x78   :  { %526 = vmatprep.subr.bf16.mxu1 %v719_v0  ;;  %v149_v32 = vmul.f32 %v844_v10, %v132_v18  ;;  %v281_v37 = vmul.f32 %v855_v44, %v264_v24  ;;  %v530_v38 = vpack.c.bf16 %v294_v22, %v293_v21  ;;  %v295_v39 = vadd.f32 %v279_v19, %v245_v26  ;;  %v249_v60 = vld [vmem:[#allocation9 + $0x50] sm:$0xff]  ;;  %v251_v7 = vld [vmem:[#allocation9 + $0x60] sm:$0xff]  ;;  %v252_v8 = vld [vmem:[#allocation9 + $0x68] sm:$0xff] }
  0x79   :  { %v296_v40 = vadd.f32 %v280_v23, %v246_v27  ;;  %v282_v42 = vmul.f32 %v855_v44, %v265_v28  ;;  %v150_v43 = vmul.f32 %v844_v10, %v133_v33  ;;  %v515_v48 = vpack.c.bf16 %v163_v31, %v162_v30  ;;  %v101_v14 = vld [vmem:[#allocation6] sm:$0xff]  ;;  %v270_v16 = vld [vmem:[#allocation12 + $0x70] sm:$0xff] }
  0x7a   :  { %507 = vmatpush3.bf16.msra.mxu0 %v506_v53  ;;  %v164_v49 = vadd.f32 %v148_v25, %v114_v34  ;;  %v165_v50 = vadd.f32 %v149_v32, %v115_v35  ;;  %v151_v51 = vmul.f32 %v844_v10, %v134_v36  ;;  %v117_v53 = vld [vmem:[#allocation7 + $0x78] sm:$0xff]  ;;  %v297_v54 = vadd.f32 %v281_v37, %v247_v41 }
  0x7b   :  { %508 = vmatprep.subr.bf16.mxu0 %v719_v0  ;;  %528 = vmatpush3.bf16.msra.mxu1 %v527_v20  ;;  %v533_v55 = vpack.c.bf16 %v296_v40, %v295_v39  ;;  %v298_v56 = vadd.f32 %v282_v42, %v248_v45  ;;  %v283_v57 = vmul.f32 %v855_v44, %v266_v46  ;;  %v271_v17 = vld [vmem:[#allocation12 + $0x78] sm:$0xff]  ;;  %v253_v20 = vld [vmem:[#allocation9 + $0x70] sm:$0xff] }
  0x7c   :  { %529 = vmatprep.subr.bf16.mxu1 %v719_v0  ;;  %v284_v58 = vmul.f32 %v855_v44, %v267_v47  ;;  %v518_v10 = vpack.c.bf16 %v165_v50, %v164_v49  ;;  %v166_v63 = vadd.f32 %v150_v43, %v116_v52  ;;  %v167_v1 = vadd.f32 %v151_v51, %v117_v53  ;;  %v254_v21 = vld [vmem:[#allocation9 + $0x78] sm:$0xff] }
  0x7d   :  { %v285_v2 = vmul.f32 %v855_v44, %v268_v59  ;;  %v536_v3 = vpack.c.bf16 %v298_v56, %v297_v54  ;;  %v299_v4 = vadd.f32 %v283_v57, %v249_v60  ;;  %v286_v6 = vmul.f32 %v855_v44, %v269_v62 }
  0x7e   :  { %510 = vmatpush3.bf16.msra.mxu0 %v509_v5  ;;  %v300_v5 = vadd.f32 %v284_v58, %v250_v61  ;;  %v521_v9 = vpack.c.bf16 %v167_v1, %v166_v63  ;;  %v287_v18 = vmul.f32 %v855_v44, %v270_v16  ;;  %v288_v19 = vmul.f32 %v855_v44, %v271_v17 }
  0x7f   :  { %511 = vmatprep.subr.bf16.mxu0 %v719_v0  ;;  %531 = vmatpush3.bf16.msra.mxu1 %v530_v38  ;;  %v301_v12 = vadd.f32 %v285_v2, %v251_v7  ;;  %v302_v13 = vadd.f32 %v286_v6, %v252_v8 }
  0x80   :  { %532 = vmatprep.subr.bf16.mxu1 %v719_v0  ;;  %v539_v11 = vpack.c.bf16 %v300_v5, %v299_v4  ;;  %v303_v22 = vadd.f32 %v287_v18, %v253_v20  ;;  %v304_v23 = vadd.f32 %v288_v19, %v254_v21 }
  0x81   :  { %v542_v15 = vpack.c.bf16 %v302_v13, %v301_v12 }
  0x82   :  { %513 = vmatpush3.bf16.msra.mxu0 %v512_v29  ;;  %v545_v24 = vpack.c.bf16 %v304_v23, %v303_v22 }
  0x83   :  { %514 = vmatprep.subr.bf16.mxu0 %v719_v0  ;;  %534 = vmatpush3.bf16.msra.mxu1 %v533_v55 }
  0x84   :  { %535 = vmatprep.subr.bf16.mxu1 %v719_v0 }
  0x86   :  { %516 = vmatpush3.bf16.msra.mxu0 %v515_v48 }
  0x87   :  { %517 = vmatprep.subr.bf16.mxu0 %v719_v0  ;;  %537 = vmatpush3.bf16.msra.mxu1 %v536_v3 }
  0x88   :  { %538 = vmatprep.subr.bf16.mxu1 %v719_v0 }
  0x8a   :  { %519 = vmatpush3.bf16.msra.mxu0 %v518_v10 }
  0x8b   :  { %520 = vmatprep.subr.bf16.mxu0 %v719_v0  ;;  %540 = vmatpush3.bf16.msra.mxu1 %v539_v11 }
  0x8c   :  { %541 = vmatprep.subr.bf16.mxu1 %v719_v0 }
  0x8e   :  { %522 = vmatpush3.bf16.msra.mxu0 %v521_v9 }
  0x8f   :  { %543 = vmatpush3.bf16.msra.mxu1 %v542_v15 }
  0x90   :  { %544 = vmatprep.subr.bf16.mxu1 %v719_v0 }
  0x91   :  { %462 = vmatmul.mubr.f32.vlgmr.msra.gmra.mrb[0].mxu0 %v101_v14 }
  0x93   :  { %546 = vmatpush3.bf16.msra.mxu1 %v545_v24 }
 0x164   :  { %v234_v25 = vpop.f32.mrb[0].mxu0 }
 0x165   :  { %v238_v26 = vmax.f32 %v234_v25, 0.0  ;;  %v463_v27 = vpop.f32.mrb[1].mxu0 }
 0x167   :  { %497 = vmatmul.mubr.f32.vlgmr.msra.gmra.mrb[0].mxu1 %v238_v26 }
 0x23a   :  { %v371_v0 = vpop.f32.mrb[0].mxu1 }
 0x23b   :  { %375 = vst [vmem:[#allocation13] sm:$0xff] %v371_v0  ;;  %v498_v28 = vpop.f32.mrb[1].mxu1 }
 0x23c   :  { %690 = shalt.err (!%p687_p5)
}
 0x23d   :  { %s691_s2 = scalar_lea.hbm %s912_s6, 128 }
 0x23e   :  { %p692_p6 = scmp.ne.s32.totalorder %s912_s6, %s691_s2  ;;  %p695_p7 = scmp.lt.u32.totalorder %s691_s2, %s912_s6 }
 0x240   :  { %p697_p8 = pnand %p695_p7, %p692_p6 }
 0x242   :  { %700 = shalt.err (!%p697_p8)
}
 0x243   :  { %385 = dma.vmem_to_hbm [thread:$0]  %s383_s8, 128, %s912_s6, [#allocation4]  }
 0x244   :  { %709 = dma.done.wait [#allocation4], 128  }
 0x245   :  { %710 = vsyncadd [#allocation4], 4294967168 }
 0x246   :  { %389 = vsyncpa [#allocation3], 1 }
 0x247   :  { %390 = vsyncpa [#allocation8], 1 }
 0x248   :  { %391 = vsyncpa [#allocation11], 1 }
 0x249   :  { %392 = vsyncpa [#allocation4], 1 }
 0x24a   :  { %393 = vsyncpa [#allocation5], 1 }

</bundles_post_ra>
